<compile_context>
chip_gen: v5e
topology: v5e:2x2
jax: 0.10.0
libtpu: 0.0.40
codegen_flags: <defaults>
</compile_context>

<pallas_src>
import functools

import jax
import jax.numpy as jnp
from jax.experimental import pallas as pl
from jax.experimental.pallas import tpu as pltpu


def _round_up(x, m):
    return ((x + m - 1) // m) * m


def _contrastive_kernel(x_ref, tc_ref, yt_ref, tr_ref, out_ref,
                        pos_ref, neg_ref, *, margin):
    j = pl.program_id(1)

    # --- per-i-block prologue: zero the row accumulators ---
    @pl.when(j == 0)
    def _():
        pos_ref[...] = jnp.zeros_like(pos_ref)
        neg_ref[...] = jnp.zeros_like(neg_ref)

    # (tm, K) @ (K, tn) -> (tm, tn) on the MXU.  Operands are already
    # L2-normalized (and bf16 by default); accumulate in f32.
    sim = jnp.dot(x_ref[...], yt_ref[...], preferred_element_type=jnp.float32)

    same = tc_ref[...] == tr_ref[...]                 # (tm,1)==(1,tn) -> (tm,tn)
    pos_mask = same & (sim < (1.0 - 1e-5))
    neg_mask = jnp.logical_not(same) & (sim > margin)

    pos_ref[...] += jnp.sum(jnp.where(pos_mask, 1.0 - sim, 0.0),
                            axis=1, keepdims=True)
    neg_ref[...] += jnp.sum(jnp.where(neg_mask, sim, 0.0),
                            axis=1, keepdims=True)

    # --- per-i-block epilogue: rows with no surviving positive pair are
    # skipped.  pos > 0 is exact: every surviving positive term > 1e-5. ---
    @pl.when(j == pl.num_programs(1) - 1)
    def _():
        pos = pos_ref[...]
        row_loss = jnp.where(pos > 0.0, pos + neg_ref[...], 0.0)
        out_ref[...] = jnp.broadcast_to(jnp.sum(row_loss), out_ref.shape)


def contrastive_loss(inputs_col, targets_col, inputs_row, target_row,
                     margin=0.5, *, tm=256, tn=512, use_bf16_matmul=True):
    """inputs_col: (N, D), targets_col: (N,), inputs_row: (M, D), target_row: (M,).

    Note: with bf16 operands (default), borderline pairs whose similarity sits
    exactly at the 1-1e-5 / margin thresholds may round differently than a pure
    f32 computation; pass use_bf16_matmul=False for bit-for-bit f32 behavior.
    """
    n, d = inputs_col.shape
    m, d2 = inputs_row.shape
    assert d == d2, "feature dims must match"

    op_dtype = jnp.bfloat16 if use_bf16_matmul else jnp.float32

    # L2-normalize ONCE in the wrapper (f32), exactly as the PyTorch l2_norm.
    x = inputs_col.astype(jnp.float32)
    y = inputs_row.astype(jnp.float32)
    x = x / jnp.sqrt(jnp.sum(x * x, axis=1, keepdims=True) + 1e-12)
    y = y / jnp.sqrt(jnp.sum(y * y, axis=1, keepdims=True) + 1e-12)

    tc = targets_col.astype(jnp.int32).reshape(-1)
    tr = target_row.astype(jnp.int32).reshape(-1)

    # Tile sizes clamped to (8, 128)-aligned covers of the (padded) problem.
    tm = min(_round_up(tm, 8), _round_up(n, 8))
    tn = min(_round_up(tn, 128), _round_up(m, 128))
    # v7x megacore: keep >= 2 i-blocks when the row dim is big enough so the
    # "parallel" axis can shard across both TensorCores (harmless elsewhere).
    n8 = _round_up(n, 8)
    if tm >= n8 and n8 >= 256:
        tm = _round_up((n8 + 1) // 2, 8)

    n_pad = _round_up(n, tm)
    m_pad = _round_up(m, tn)
    d_pad = _round_up(d, 128)

    # Zero-pad normalized features (pad after normalization: norms unchanged,
    # padded rows/cols give similarities of exactly 0, also exact in bf16).
    # Pad labels with sentinels strictly below every real label: padded rows
    # never match any column (-> skipped via has_pos), padded columns never
    # match any row and their similarities are 0 (-> contribute 0 to neg_loss).
    lab_min = jnp.minimum(jnp.min(tc), jnp.min(tr))
    x = jnp.pad(x, ((0, n_pad - n), (0, d_pad - d))).astype(op_dtype)
    y = jnp.pad(y, ((0, m_pad - m), (0, d_pad - d))).astype(op_dtype)
    yt = y.T                                   # K-major RHS: (d_pad, m_pad)
    tc = jnp.concatenate([tc, jnp.full((n_pad - n,), lab_min - 1, jnp.int32)])
    tr = jnp.concatenate([tr, jnp.full((m_pad - m,), lab_min - 2, jnp.int32)])
    tc = tc.reshape(n_pad, 1)
    tr = tr.reshape(1, m_pad)

    grid_i = n_pad // tm
    grid_j = m_pad // tn

    kernel = functools.partial(_contrastive_kernel, margin=float(margin))

    op_bytes = 2 if use_bf16_matmul else 4
    cost = pl.CostEstimate(
        flops=2 * n_pad * m_pad * d_pad,
        transcendentals=0,
        bytes_accessed=(op_bytes * (n_pad * d_pad + grid_i * m_pad * d_pad)
                        + 4 * (n_pad + grid_i * m_pad)
                        + 4 * grid_i * 8 * 128),
    )

    # Explicit VMEM budget: double-buffered input tiles + f32 sim/mask temps
    # + accumulators + output, with headroom.  Clamped to [32 MiB, 100 MiB];
    # defaults land at ~32 MiB which fits v5e/v6e (128 MiB) and v7x (64 MiB/TC).
    vmem_est = (2 * tm * d_pad * op_bytes          # x tiles (double-buffered)
                + 2 * tn * d_pad * op_bytes        # y^T tiles (double-buffered)
                + 4 * tm * tn * 4                  # sim + mask/select temps (f32)
                + 2 * tm * 4                       # pos/neg accumulators
                + 2 * 8 * 128 * 4                  # output block
                + (1 << 20))                       # labels + regalloc slack
    vmem_limit = int(min(max(2 * vmem_est, 32 << 20), 100 << 20))

    partials = pl.pallas_call(
        kernel,
        out_shape=jax.ShapeDtypeStruct((grid_i, 8, 128), jnp.float32),
        grid_spec=pltpu.PrefetchScalarGridSpec(
            num_scalar_prefetch=0,
            grid=(grid_i, grid_j),
            in_specs=[
                pl.BlockSpec((tm, d_pad), lambda i, j: (i, 0)),   # x tile
                pl.BlockSpec((tm, 1), lambda i, j: (i, 0)),       # row labels
                pl.BlockSpec((d_pad, tn), lambda i, j: (0, j)),   # y^T tile (K-major)
                pl.BlockSpec((1, tn), lambda i, j: (0, j)),       # col labels
            ],
            out_specs=pl.BlockSpec((1, 8, 128), lambda i, j: (i, 0, 0)),
            scratch_shapes=[
                pltpu.VMEM((tm, 1), jnp.float32),       # pos-loss accumulator
                pltpu.VMEM((tm, 1), jnp.float32),       # neg-loss accumulator
            ],
        ),
        compiler_params=pltpu.CompilerParams(
            dimension_semantics=("parallel", "arbitrary"),
            vmem_limit_bytes=vmem_limit),
        cost_estimate=cost,
    )(x, tc, yt, tr)

    # Each i-block wrote its partial sum broadcast over an (8,128) slab.
    return jnp.sum(partials[:, 0, 0]) / jnp.float32(n)


def _reference(inputs_col, targets_col, inputs_row, target_row, margin=0.5,
               operand_dtype=jnp.float32):
    """Pure-JAX reference mirroring the PyTorch forward (vectorized).

    operand_dtype lets the test mirror the kernel's bf16 operand rounding.
    """
    def l2n(v):
        return v / jnp.sqrt(jnp.sum(v * v, axis=1, keepdims=True) + 1e-12)

    n = inputs_col.shape[0]
    a = l2n(inputs_col.astype(jnp.float32)).astype(operand_dtype)
    b = l2n(inputs_row.astype(jnp.float32)).astype(operand_dtype)
    sim = jnp.dot(a, b.T, preferred_element_type=jnp.float32)
    eps = 1e-5
    same = targets_col[:, None] == target_row[None, :]
    pos_mask = same & (sim < 1 - eps)
    neg_mask = (~same) & (sim > margin)
    pos_loss = jnp.sum(jnp.where(pos_mask, 1.0 - sim, 0.0), axis=1)
    neg_loss = jnp.sum(jnp.where(neg_mask, sim, 0.0), axis=1)
    has_pos = jnp.sum(pos_mask, axis=1) > 0
    row_loss = jnp.where(has_pos, pos_loss + neg_loss, 0.0)
    return jnp.sum(row_loss) / n


if __name__ == "__main__":
    key = jax.random.PRNGKey(0)
    k1, k2, k3, k4, k5, k6, k7, k8 = jax.random.split(key, 8)

    # Small case (single tile), default bf16 operand path.
    N, M, D = 8, 8, 32
    ic = jax.random.normal(k1, (N, D), dtype=jnp.float32)
    ir = jax.random.normal(k2, (M, D), dtype=jnp.float32)
    tc = jax.random.randint(k3, (N,), 0, 3, dtype=jnp.int32)
    tr = jax.random.randint(k4, (M,), 0, 3, dtype=jnp.int32)
    loss = jax.block_until_ready(contrastive_loss(ic, tc, ir, tr, margin=0.5))
    ref = _reference(ic, tc, ir, tr, margin=0.5, operand_dtype=jnp.bfloat16)
    assert jnp.allclose(loss, ref, rtol=1e-3, atol=1e-3), (loss, ref)

    # Non-aligned case exercising the multi-block grid + padding path, in the
    # exact-f32 mode against the f32 reference.
    N2, M2, D2 = 40, 300, 96
    ic2 = jax.random.normal(k5, (N2, D2), dtype=jnp.float32)
    ir2 = jax.random.normal(k6, (M2, D2), dtype=jnp.float32)
    tc2 = jax.random.randint(k7, (N2,), 0, 5, dtype=jnp.int32)
    tr2 = jax.random.randint(k8, (M2,), 0, 5, dtype=jnp.int32)
    loss2 = jax.block_until_ready(
        contrastive_loss(ic2, tc2, ir2, tr2, margin=0.5,
                         tm=16, tn=128, use_bf16_matmul=False))
    ref2 = _reference(ic2, tc2, ir2, tr2, margin=0.5,
                      operand_dtype=jnp.float32)
    assert jnp.allclose(loss2, ref2, rtol=1e-5, atol=1e-4), (loss2, ref2)

    # Same non-aligned case with default (bf16) settings and default tiles.
    loss3 = jax.block_until_ready(
        contrastive_loss(ic2, tc2, ir2, tr2, margin=0.5))
    ref3 = _reference(ic2, tc2, ir2, tr2, margin=0.5,
                      operand_dtype=jnp.bfloat16)
    assert jnp.allclose(loss3, ref3, rtol=1e-3, atol=1e-3), (loss3, ref3)

    print("KERNEL_OK")
</pallas_src>

<mosaic_0001>
module attributes {stable_mosaic.version = 11 : i64} {
  func.func @_contrastive_kernel(%arg0: i32, %arg1: i32, %arg2: memref<8x128xbf16, #tpu.memory_space<vmem>>, %arg3: memref<8x1xi32, #tpu.memory_space<vmem>>, %arg4: memref<128x128xbf16, #tpu.memory_space<vmem>>, %arg5: memref<1x128xi32, #tpu.memory_space<vmem>>, %arg6: memref<1x8x128xf32, #tpu.memory_space<vmem>>, %arg7: memref<8x1xf32, #tpu.memory_space<vmem>>, %arg8: memref<8x1xf32, #tpu.memory_space<vmem>>) attributes {dimension_semantics = [#tpu.dimension_semantics<parallel>, #tpu.dimension_semantics<arbitrary>], iteration_bounds = array<i64: 1, 1>, scalar_prefetch = 0 : i64, scratch_operands = 2 : i64, tpu.core_type = #tpu.core_type<tc>, window_params = [{transform_indices = @transform_0, window_bounds = array<i64: 8, 128>}, {transform_indices = @transform_1, window_bounds = array<i64: 8, 1>}, {transform_indices = @transform_2, window_bounds = array<i64: 128, 128>}, {transform_indices = @transform_3, window_bounds = array<i64: 1, 128>}, {transform_indices = @transform_4, window_bounds = array<i64: 1, 8, 128>}]} {
    %c0_i32 = arith.constant 0 : i32
    %0 = arith.cmpi eq, %arg1, %c0_i32 : i32
    %1 = arith.extui %0 : i1 to i32
    %c0_i32_0 = arith.constant 0 : i32
    %2 = arith.cmpi ne, %1, %c0_i32_0 : i32
    scf.if %2 {
      %cst_26 = arith.constant 0.000000e+00 : f32
      %37 = vector.broadcast %cst_26 : f32 to vector<8x1xf32>
      %c0_27 = arith.constant 0 : index
      %c0_28 = arith.constant 0 : index
      %38 = vector.load %arg7[%c0_27, %c0_28] : memref<8x1xf32, #tpu.memory_space<vmem>>, vector<8x1xf32>
      tpu.vector_store %arg7[%c0_27, %c0_28], %37 {strides = array<i32>} : memref<8x1xf32, #tpu.memory_space<vmem>>, vector<8x1xf32>,
      %cst_29 = arith.constant 0.000000e+00 : f32
      %39 = vector.broadcast %cst_29 : f32 to vector<8x1xf32>
      %c0_30 = arith.constant 0 : index
      %c0_31 = arith.constant 0 : index
      %40 = vector.load %arg8[%c0_30, %c0_31] : memref<8x1xf32, #tpu.memory_space<vmem>>, vector<8x1xf32>
      tpu.vector_store %arg8[%c0_30, %c0_31], %39 {strides = array<i32>} : memref<8x1xf32, #tpu.memory_space<vmem>>, vector<8x1xf32>,
    } else {
    }
    %c0 = arith.constant 0 : index
    %c0_1 = arith.constant 0 : index
    %3 = vector.load %arg2[%c0, %c0_1] : memref<8x128xbf16, #tpu.memory_space<vmem>>, vector<8x128xbf16>
    %c0_2 = arith.constant 0 : index
    %c0_3 = arith.constant 0 : index
    %4 = vector.load %arg4[%c0_2, %c0_3] : memref<128x128xbf16, #tpu.memory_space<vmem>>, vector<128x128xbf16>
    %cst = arith.constant dense<0.000000e+00> : vector<8x128xf32>
    %5 = tpu.matmul %3, %4, %cst {dimension_numbers = #tpu.dot_dimension_numbers<[1], [0], [0], [1], [0, 0, 1, 1], [], []>} : vector<8x128xbf16>, vector<128x128xbf16>, vector<8x128xf32> -> vector<8x128xf32>
    %c0_4 = arith.constant 0 : index
    %c0_5 = arith.constant 0 : index
    %6 = vector.load %arg3[%c0_4, %c0_5] : memref<8x1xi32, #tpu.memory_space<vmem>>, vector<8x1xi32>
    %c0_6 = arith.constant 0 : index
    %c0_7 = arith.constant 0 : index
    %7 = vector.load %arg5[%c0_6, %c0_7] : memref<1x128xi32, #tpu.memory_space<vmem>>, vector<1x128xi32>
    %8 = vector.broadcast %6 : vector<8x1xi32> to vector<8x128xi32>
    %9 = vector.broadcast %7 : vector<1x128xi32> to vector<8x128xi32>
    %10 = arith.cmpi eq, %8, %9 : vector<8x128xi32>
    %cst_8 = arith.constant 0.999989986 : f32
    %11 = vector.broadcast %cst_8 : f32 to vector<8x128xf32>
    %12 = arith.cmpf olt, %5, %11 : vector<8x128xf32>
    %13 = arith.andi %10, %12 : vector<8x128xi1>
    %cst_9 = arith.constant dense<true> : vector<8x128xi1>
    %14 = arith.xori %10, %cst_9 : vector<8x128xi1>
    %cst_10 = arith.constant 5.000000e-01 : f32
    %15 = vector.broadcast %cst_10 : f32 to vector<8x128xf32>
    %16 = arith.cmpf ogt, %5, %15 : vector<8x128xf32>
    %17 = arith.andi %14, %16 : vector<8x128xi1>
    %c0_11 = arith.constant 0 : index
    %c0_12 = arith.constant 0 : index
    %18 = vector.load %arg7[%c0_11, %c0_12] : memref<8x1xf32, #tpu.memory_space<vmem>>, vector<8x1xf32>
    %cst_13 = arith.constant 1.000000e+00 : f32
    %19 = vector.broadcast %cst_13 : f32 to vector<8x128xf32>
    %20 = arith.subf %19, %5 : vector<8x128xf32>
    %cst_14 = arith.constant 0.000000e+00 : f32
    %21 = vector.broadcast %cst_14 : f32 to vector<8x128xf32>
    %22 = arith.select %13, %20, %21 : vector<8x128xi1>, vector<8x128xf32>
    %cst_15 = arith.constant dense<0.000000e+00> : vector<8xf32>
    %23 = vector.multi_reduction <add>, %22, %cst_15 [1] : vector<8x128xf32> to vector<8xf32>
    %24 = vector.shape_cast %23 : vector<8xf32> to vector<8x1xf32>
    %25 = arith.addf %18, %24 : vector<8x1xf32>
    %c0_16 = arith.constant 0 : index
    %c0_17 = arith.constant 0 : index
    %26 = vector.load %arg7[%c0_16, %c0_17] : memref<8x1xf32, #tpu.memory_space<vmem>>, vector<8x1xf32>
    tpu.vector_store %arg7[%c0_16, %c0_17], %25 {strides = array<i32>} : memref<8x1xf32, #tpu.memory_space<vmem>>, vector<8x1xf32>,
    %c0_18 = arith.constant 0 : index
    %c0_19 = arith.constant 0 : index
    %27 = vector.load %arg8[%c0_18, %c0_19] : memref<8x1xf32, #tpu.memory_space<vmem>>, vector<8x1xf32>
    %cst_20 = arith.constant 0.000000e+00 : f32
    %28 = vector.broadcast %cst_20 : f32 to vector<8x128xf32>
    %29 = arith.select %17, %5, %28 : vector<8x128xi1>, vector<8x128xf32>
    %cst_21 = arith.constant dense<0.000000e+00> : vector<8xf32>
    %30 = vector.multi_reduction <add>, %29, %cst_21 [1] : vector<8x128xf32> to vector<8xf32>
    %31 = vector.shape_cast %30 : vector<8xf32> to vector<8x1xf32>
    %32 = arith.addf %27, %31 : vector<8x1xf32>
    %c0_22 = arith.constant 0 : index
    %c0_23 = arith.constant 0 : index
    %33 = vector.load %arg8[%c0_22, %c0_23] : memref<8x1xf32, #tpu.memory_space<vmem>>, vector<8x1xf32>
    tpu.vector_store %arg8[%c0_22, %c0_23], %32 {strides = array<i32>} : memref<8x1xf32, #tpu.memory_space<vmem>>, vector<8x1xf32>,
    %c0_i32_24 = arith.constant 0 : i32
    %34 = arith.cmpi eq, %arg1, %c0_i32_24 : i32
    %35 = arith.extui %34 : i1 to i32
    %c0_i32_25 = arith.constant 0 : i32
    %36 = arith.cmpi ne, %35, %c0_i32_25 : i32
    scf.if %36 {
      %c0_26 = arith.constant 0 : index
      %c0_27 = arith.constant 0 : index
      %37 = vector.load %arg7[%c0_26, %c0_27] : memref<8x1xf32, #tpu.memory_space<vmem>>, vector<8x1xf32>
      %cst_28 = arith.constant 0.000000e+00 : f32
      %38 = vector.broadcast %cst_28 : f32 to vector<8x1xf32>
      %39 = arith.cmpf ogt, %37, %38 : vector<8x1xf32>
      %c0_29 = arith.constant 0 : index
      %c0_30 = arith.constant 0 : index
      %40 = vector.load %arg8[%c0_29, %c0_30] : memref<8x1xf32, #tpu.memory_space<vmem>>, vector<8x1xf32>
      %41 = arith.addf %37, %40 : vector<8x1xf32>
      %cst_31 = arith.constant 0.000000e+00 : f32
      %42 = vector.broadcast %cst_31 : f32 to vector<8x1xf32>
      %43 = arith.select %39, %41, %42 : vector<8x1xi1>, vector<8x1xf32>
      %44 = vector.shape_cast %43 : vector<8x1xf32> to vector<1x8x1xf32>
      %cst_32 = arith.constant dense<0.000000e+00> : vector<1xf32>
      %45 = vector.multi_reduction <add>, %44, %cst_32 [1, 2] : vector<1x8x1xf32> to vector<1xf32>
      %46 = vector.shape_cast %45 : vector<1xf32> to vector<1x1x1xf32>
      %47 = vector.extract %46[0, 0, 0] : f32 from vector<1x1x1xf32>
      %48 = vector.broadcast %47 : f32 to vector<1x8x128xf32>
      %c0_33 = arith.constant 0 : index
      %c0_34 = arith.constant 0 : index
      %c0_35 = arith.constant 0 : index
      %49 = vector.load %arg6[%c0_33, %c0_34, %c0_35] : memref<1x8x128xf32, #tpu.memory_space<vmem>>, vector<1x8x128xf32>
      tpu.vector_store %arg6[%c0_33, %c0_34, %c0_35], %48 {strides = array<i32>} : memref<1x8x128xf32, #tpu.memory_space<vmem>>, vector<1x8x128xf32>,
    } else {
    }
    return
  }
  func.func @transform_0(%arg0: i32, %arg1: i32) -> (i32, i32) {
    %c0_i32 = arith.constant 0 : i32
    %c0_i32_0 = arith.constant 0 : i32
    return %arg0, %c0_i32 : i32, i32
  }
  func.func @transform_1(%arg0: i32, %arg1: i32) -> (i32, i32) {
    %c0_i32 = arith.constant 0 : i32
    %c0_i32_0 = arith.constant 0 : i32
    return %arg0, %c0_i32 : i32, i32
  }
  func.func @transform_2(%arg0: i32, %arg1: i32) -> (i32, i32) {
    %c0_i32 = arith.constant 0 : i32
    %c0_i32_0 = arith.constant 0 : i32
    return %c0_i32, %arg1 : i32, i32
  }
  func.func @transform_3(%arg0: i32, %arg1: i32) -> (i32, i32) {
    %c0_i32 = arith.constant 0 : i32
    %c0_i32_0 = arith.constant 0 : i32
    return %c0_i32, %arg1 : i32, i32
  }
  func.func @transform_4(%arg0: i32, %arg1: i32) -> (i32, i32, i32) {
    %c0_i32 = arith.constant 0 : i32
    %c0_i32_0 = arith.constant 0 : i32
    %c0_i32_1 = arith.constant 0 : i32
    return %arg0, %c0_i32, %c0_i32_0 : i32, i32, i32
  }
}

</mosaic_0001>

<bundles_post_ra>
// kernel: tpu_custom_call.1
= control target key start
LH: loop header
LB: loop body
LE: loop exit
PB: predicated region body
PF: predicated region fallthrough
CT: control target
= control target key end

     0   :  { %9 = vsyncpa [#allocation5], 0  ;;  %s337_s0 = inlined_call_operand.vmem [shape: bf16[8,128], index: 0, kind: input, shape index: {}]   ;;  %s338_s1 = inlined_call_operand.vmem [shape: s32[8,1], index: 1, kind: input, shape index: {}]   ;;  %s339_s2 = inlined_call_operand.hbm [shape: bf16[128,128], index: 2, kind: input, shape index: {}]   ;;  %s340_s3 = inlined_call_operand.vmem [shape: s32[1,128], index: 3, kind: input, shape index: {}]   ;;  %s341_s4 = inlined_call_operand.hbm [shape: f32[1,8,128], index: 4, kind: output, shape index: {}]  }
   0x1   :  { %10 = vsyncpa [#allocation6], 0  ;;  %s19_s17 = sshll.u32 %s339_s2, 4  ;;  %s285_s18 = smov [#allocation4]   ;;  %s20_s17 = int_to_ptr.hbm [resolvable:$true] %s19_s17 }
   0x2   :  { %s21_s19 = sshll.u32 %s285_s18, 4  ;;  %s286_s20 = smov 64   ;;  %s22_s19 = int_to_ptr.vmem [resolvable:$true] %s21_s19 }
   0x3   :  { %s287_s21 = smov 4  }
   0x4   :  { %27 = dma.hbm_to_vmem [thread:$0]  %s20_s17, 1024, %s22_s19, [#allocation5], %s286_s20, %s286_s20, %s287_s21  }
   0x5   :  { %281 = dma.done.wait [#allocation5], 1024  }
   0x6   :  { %282 = vsyncadd [#allocation5], 4294966272  ;;  %v221_v0 = vld [vmem:[#allocation4 + $0x38] sm:$0xff]  ;;  %v220_v1 = vld [vmem:[#allocation4 + $0x30] sm:$0xff]  ;;  %v288_v2 = vmov 0   ;;  %vm38_vm0 = vcmask 7168  }
   0x7   :  { %106 = vmatpush.bf16.msra.mxu0 %v221_v0  ;;  %231 = vset.pattern.permute.xlu0 %v288_v2  ;;  %v119_v3 = vld [vmem:[%s338_s1] sm:$0xff]  ;;  %v219_v4 = vld [vmem:[#allocation4 + $0x28] sm:$0xff]  ;;  %v218_v5 = vld [vmem:[#allocation4 + $0x20] sm:$0xff]  ;;  %v289_v11 = vmov 0.0   ;;  %vm290_vm2 = vmmov 1   ;;  %s172_s28 = sshll.u32 %s341_s4, 4  ;;  %s173_s28 = int_to_ptr.hbm [resolvable:$true] %s172_s28 }
   0x8   :  { %122 = vperm.xlu0 %231, %v119_v3   ;;  %v217_v6 = vld [vmem:[#allocation4 + $0x18] sm:$0xff]  ;;  %v216_v7 = vld [vmem:[#allocation4 + $0x10] sm:$0xff]  ;;  %v215_v8 = vld [vmem:[#allocation4 + $0x8] sm:$0xff]  ;;  %40 = vst.msk [vmem:[#allocation3] sm:$0xff] %vm38_vm0, %v289_v11 }
   0x9   :  { %v214_v9 = vld [vmem:[#allocation4] sm:$0xff]  ;;  %v41_v10 = vld [vmem:[%s337_s0] sm:$0xf]  ;;  %39 = vst.msk [vmem:[#allocation2] sm:$0xff] %vm38_vm0, %v289_v11  ;;  %s291_s0 = smov [#allocation7]  }
   0xa   :  { %v232_v12 = vld [vmem:[%s340_s3] ss:$0 sm:$0xff]  ;;  %s170_s3 = sshll.u32 %s291_s0, 4  ;;  %s171_s3 = int_to_ptr.vmem [resolvable:$true] %s170_s3 }
   0xb   :  { %107 = vmatpush.bf16.msra.mxu0 %v220_v1 }
   0xf   :  { %108 = vmatpush.bf16.msra.mxu0 %v219_v4  ;;  %v139_v19 = vld [vmem:[#allocation3] sm:$0xff] }
  0x10   :  { %v131_v20 = vld [vmem:[#allocation2] sm:$0xff] }
  0x13   :  { %109 = vmatpush.bf16.msra.mxu0 %v218_v5 }
  0x17   :  { %110 = vmatpush.bf16.msra.mxu0 %v217_v6 }
  0x1b   :  { %111 = vmatpush.bf16.msra.mxu0 %v216_v7 }
  0x1f   :  { %112 = vmatpush.bf16.msra.mxu0 %v215_v8 }
  0x23   :  { %113 = vmatpush.bf16.msra.mxu0 %v214_v9 }
  0x26   :  { %114 = vmatmul.bf16.vlgmr.msra.gmra.mxu0 %v41_v10 }
  0x7a   :  { %v123_v13 = vpop.permute.xlu0 %122 }
  0x7b   :  { %vm125_vm1 = vcmp.eq.s32.totalorder %v123_v13, %v232_v12 }
  0x7c   :  { %vm128_vm3 = vmxor %vm125_vm1, %vm290_vm2 }
  0xa3   :  { %v115_v14 = vpop.f32.mrf.mxu0 }
  0xa4   :  { %vm129_vm4 = vcmp.gt.f32.partialorder %v115_v14, 0.5  ;;  %vm126_vm5 = vcmp.lt.f32.partialorder %v115_v14, 0.99999  ;;  %v132_v15 = vsub.f32 1.0, %v115_v14 }
  0xa5   :  { %vm130_vm6 = vmand %vm128_vm3, %vm129_vm4 }
  0xa6   :  { %v140_v16 = vsel %vm130_vm6, %v115_v14, 0.0  ;;  %vm127_vm7 = vmand %vm125_vm1, %vm126_vm5 }
  0xa7   :  { %141 = vadd.xlane.f32.xlu1 %v140_v16  ;;  %v133_v17 = vsel %vm127_vm7, %v132_v15, 0.0 }
  0xa8   :  { %134 = vadd.xlane.f32.xlu0 %v133_v17 }
  0xab   :  { %v117_v18 = vpop.f32.mrf.mxu0 }
 0x11a   :  { %v142_v21 = vpop.xlane.xlu1 %141 }
 0x11b   :  { %v143_v22 = vadd.f32 %v142_v21, %v139_v19  ;;  %v135_v23 = vpop.xlane.xlu0 %134 }
 0x11c   :  { %v136_v24 = vadd.f32 %v135_v23, %v131_v20 }
 0x11d   :  { %144 = vst.msk [vmem:[#allocation3] sm:$0xff] %vm38_vm0, %v143_v22 }
 0x11e   :  { %138 = vst.msk [vmem:[#allocation2] sm:$0xff] %vm38_vm0, %v136_v24 }
 0x124   :  { %v150_v25 = vld [vmem:[#allocation3] sm:$0xff] }
 0x125   :  { %v148_v26 = vld [vmem:[#allocation2] sm:$0xff] }
 0x126   :  { %vm149_vm8 = vcmp.gt.f32.partialorder %v148_v26, 0.0  ;;  %v151_v27 = vadd.f32 %v150_v25, %v148_v26 }
 0x128   :  { %v152_v28 = vsel %vm149_vm8, %v151_v27, 0.0 }
 0x129   :  { %v153_v29 = vsel %vm38_vm0, %v152_v28, 0.0 }
 0x12a   :  { %154 = vadd.xlane.f32.xlu1 %v153_v29 }
 0x19d   :  { %v155_v30 = vpop.xlane.xlu1 %154 }
 0x19e   :  { %v156_v31 = vrot.slane %v155_v30, 4 }
 0x1a0   :  { %v157_v32 = vadd.f32 %v156_v31, %v155_v30 }
 0x1a2   :  { %v158_v33 = vrot.slane %v157_v32, 2 }
 0x1a4   :  { %v159_v34 = vadd.f32 %v158_v33, %v157_v32 }
 0x1a6   :  { %v160_v35 = vrot.slane %v159_v34, 1 }
 0x1a8   :  { %v161_v36 = vadd.f32 %v160_v35, %v159_v34 }
 0x1aa   :  { %222 = vpush %v161_v36 }
 0x1db   :  { %s223_s29 = spop %222 }
 0x1dc   :  { %v163_v37 = vstv %s223_s29 }
 0x1dd   :  { %164 = vst [vmem:[#allocation7] sm:$0xff] %v163_v37 }
 0x1de   :  { %175 = dma.vmem_to_hbm [thread:$0]  %s171_s3, 128, %s173_s28, [#allocation6]  }
 0x1df   :  { %283 = dma.done.wait [#allocation6], 128  }
 0x1e0   :  { %284 = vsyncadd [#allocation6], 4294967168 }
 0x1e1   :  { %180 = vsyncpa [#allocation5], 1 }
 0x1e2   :  { %181 = vsyncpa [#allocation6], 1 }

</bundles_post_ra>
